<compile_context>
chip_gen: v7x
topology: tpu7x:2x2x1
jax: 0.10.0
libtpu: 0.0.40
codegen_flags: <defaults>
</compile_context>

<pallas_src>
import functools

import jax
import jax.numpy as jnp
from jax import lax
from jax.experimental import pallas as pl
from jax.experimental.pallas import tpu as pltpu


def _round_up(x, m):
    return (x + m - 1) // m * m


def _vmem_capacity_bytes():
    """Physical VMEM of the current chip; conservative fallback if unavailable."""
    try:
        return int(pltpu.get_tpu_info().vmem_capacity_bytes)
    except Exception:
        return 64 << 20  # v7x per-TensorCore budget (smallest of the fleet)


def _logits_kernel(x_ref, w_ref, *rest, scale, soft_cap, has_bias, quantized):
    """One vocab tile: logits = x @ w.T [* wscale] [+ b], then fused soft-cap * scale.

    x_ref : (Np, H)   selected hidden states, already in the MXU dtype (resident)
    w_ref : (TV, H)   lm_head weight tile (bf16 or int8)
    rest  : [(1,TV) weight scales if quantized], [(1,TV) bias if has_bias], (Np,TV) out
    """
    idx = 0
    ws_ref = None
    b_ref = None
    if quantized:
        ws_ref = rest[idx]
        idx += 1
    if has_bias:
        b_ref = rest[idx]
        idx += 1
    o_ref = rest[idx]

    x = x_ref[...]                       # cast hoisted to wrapper: no per-step VPU pass
    w = w_ref[...]
    if quantized:
        w = w.astype(x.dtype)            # int8 values are exact in bf16

    # x @ w.T : contract the hidden dim of both operands, accumulate in f32 on the MXU.
    logits = lax.dot_general(
        x, w,
        dimension_numbers=(((1,), (1,)), ((), ())),
        preferred_element_type=jnp.float32,
    )

    if quantized:
        # Fused dequant: per-vocab-column scale applied to the (Np, TV) f32 result.
        logits = logits * ws_ref[...].astype(jnp.float32)
    if has_bias:
        logits = logits + b_ref[...].astype(jnp.float32)

    if soft_cap is not None:
        inv_cap = 1.0 / float(soft_cap)                       # VPU mul, not EUP divide
        logits = jnp.tanh(logits * inv_cap) * (float(soft_cap) * float(scale))
    elif scale != 1.0:
        logits = logits * float(scale)

    o_ref[...] = logits.astype(o_ref.dtype)


def quantize_lm_head_int8(weight):
    """Per-vocab-row symmetric int8 quantization of an (V, H) lm_head weight."""
    w = weight.astype(jnp.float32)
    max_abs = jnp.max(jnp.abs(w), axis=1)
    scales = jnp.where(max_abs > 0, max_abs / 127.0, 1.0)
    w_q = jnp.clip(jnp.round(w / scales[:, None]), -127, 127).astype(jnp.int8)
    return w_q, scales


class LogitsProcessorPallas:
    """JAX/Pallas equivalent of vLLM's LogitsProcessor (single device)."""

    def __init__(self, vocab_size, org_vocab_size=None, scale=1.0,
                 logits_as_input=False, soft_cap=None):
        self.vocab_size = vocab_size
        self.org_vocab_size = org_vocab_size or vocab_size
        self.scale = scale
        self.logits_as_input = logits_as_input
        self.soft_cap = soft_cap

    def _get_logits(self, hidden_states, lm_head_weight, embedding_bias=None,
                    weight_scales=None, tv=None):
        n, h = hidden_states.shape
        v, h2 = lm_head_weight.shape
        assert h == h2
        v_out = self.org_vocab_size          # compute only the real vocab
        assert v_out <= v

        quantized = bool(jnp.issubdtype(lm_head_weight.dtype, jnp.integer))
        if quantized:
            assert weight_scales is not None, "int8 lm_head needs per-row scales"
            compute_dtype = jnp.bfloat16
        else:
            compute_dtype = lm_head_weight.dtype
        has_bias = embedding_bias is not None

        # Hoist the hidden-state cast out of the grid loop (done once here, not
        # once per vocab tile on the resident block inside the kernel).
        if hidden_states.dtype != compute_dtype:
            hidden_states = hidden_states.astype(compute_dtype)

        x_bytes = jnp.dtype(compute_dtype).itemsize
        w_bytes = jnp.dtype(lm_head_weight.dtype).itemsize

        # Pad rows only if needed, to the sublane-packing multiple of the compute
        # dtype (f32: 8, bf16: 16); avoids masked sublane stores and the post-kernel
        # slice copy when num_selected is already aligned.
        pad_mult = max(8 * (4 // x_bytes), 8)
        n_pad = _round_up(max(n, 1), pad_mult)
        if n_pad != n:
            hidden_states = jnp.pad(hidden_states, ((0, n_pad - n), (0, 0)))

        # Hardware-aware VMEM budget: resident hidden counted ONCE (constant
        # index_map), double-buffered weight/output/bias/scale tiles.
        cap = _vmem_capacity_bytes()
        budget = (cap * 3) // 4

        def footprint(tv_):
            f = 2 * tv_ * h * w_bytes          # double-buffered weight tiles
            f += n_pad * h * x_bytes           # resident hidden (not double-counted)
            f += 2 * n_pad * tv_ * 4           # double-buffered f32 output tiles
            if quantized:
                f += 2 * tv_ * 4
            if has_bias:
                f += 2 * tv_ * 4
            return f

        tv = 1024 if tv is None else int(tv)   # 1024 default (128 MiB parts); capped below
        tv = _round_up(tv, 128)
        tv = min(tv, _round_up(v_out, 128))
        while tv > 128 and footprint(tv) > budget:
            tv -= 128

        grid = (pl.cdiv(v_out, tv),)
        vmem_limit = int(min(max(footprint(tv) + (4 << 20), 32 << 20), cap))

        in_specs = [
            # Resident hidden block (constant index_map -> fetched once).
            # TODO(synk): pipeline_mode=pl.Buffered(1) would drop its second buffer.
            pl.BlockSpec((n_pad, h), lambda j: (0, 0)),
            pl.BlockSpec((tv, h), lambda j: (j, 0)),       # weight vocab tile
        ]
        args = [hidden_states, lm_head_weight]
        if quantized:
            in_specs.append(pl.BlockSpec((1, tv), lambda j: (0, j)))
            args.append(weight_scales.reshape(1, v).astype(jnp.float32))
        if has_bias:
            in_specs.append(pl.BlockSpec((1, tv), lambda j: (0, j)))
            args.append(embedding_bias.reshape(1, v))

        kernel = functools.partial(
            _logits_kernel, scale=self.scale, soft_cap=self.soft_cap,
            has_bias=has_bias, quantized=quantized)

        logits = pl.pallas_call(
            kernel,
            out_shape=jax.ShapeDtypeStruct((n_pad, v_out), jnp.float32),
            grid_spec=pltpu.PrefetchScalarGridSpec(
                num_scalar_prefetch=0,
                grid=grid,
                in_specs=in_specs,
                out_specs=pl.BlockSpec((n_pad, tv), lambda j: (0, j)),
            ),
            compiler_params=pltpu.CompilerParams(
                dimension_semantics=("parallel",),   # shards vocab tiles over v7x's 2 TCs
                vmem_limit_bytes=vmem_limit),
        )(*args)

        if n_pad != n:
            logits = logits[:n]
        # Single device => tensor_model_parallel_all_gather is the identity.
        # No [..., :org_vocab_size] slice: only org_vocab columns were produced.
        return logits

    def __call__(self, lm_head_weight, hidden_states, selected_token_indices,
                 embedding_bias=None, weight_scales=None, tv=None):
        if self.logits_as_input:
            logits = hidden_states
            if self.soft_cap is not None:
                logits = jnp.tanh(logits / self.soft_cap) * self.soft_cap
            if self.scale != 1.0:
                logits = logits * self.scale
        else:
            # _prune_hidden_states (glue: row gather)
            # TODO(synk): fuse via num_scalar_prefetch=1 + pl.Element hidden BlockSpec.
            pruned = jnp.take(hidden_states, selected_token_indices, axis=0)
            # soft_cap and scale are fused inside the Pallas kernel.
            logits = self._get_logits(pruned, lm_head_weight, embedding_bias,
                                      weight_scales=weight_scales, tv=tv)
        # TODO(synk): _apply_logits_processors runs arbitrary per-sequence Python
        # callables; no processors supplied => identity.
        return logits


def _reference(hidden, weight_f32, bias, idx, scale, soft_cap, org_vocab, compute_dtype):
    x = jnp.take(hidden, idx, axis=0).astype(compute_dtype).astype(jnp.float32)
    logits = x @ weight_f32.T
    if bias is not None:
        logits = logits + bias.astype(jnp.float32)
    if soft_cap is not None:
        logits = jnp.tanh(logits / soft_cap) * soft_cap
    if scale != 1.0:
        logits = logits * scale
    return logits[..., :org_vocab]


if __name__ == "__main__":
    key = jax.random.PRNGKey(0)
    k1, k2, k3 = jax.random.split(key, 3)

    num_tokens = 16     # total hidden-state rows
    num_selected = 8    # rows selected for sampling (padded to 16 internally)
    hidden = 128
    vocab = 640
    org_vocab = 640
    scale = 0.5
    soft_cap = 30.0

    hidden_states = jax.random.normal(k1, (num_tokens, hidden), dtype=jnp.float32)
    w_f32 = jax.random.normal(k2, (vocab, hidden), dtype=jnp.float32) * 0.02
    w_bf16 = w_f32.astype(jnp.bfloat16)
    embedding_bias = jax.random.normal(k3, (vocab,), dtype=jnp.float32) * 0.01
    selected_token_indices = jnp.array([1, 3, 5, 7, 9, 11, 13, 15], dtype=jnp.int32)

    proc = LogitsProcessorPallas(vocab_size=vocab, org_vocab_size=org_vocab,
                                 scale=scale, soft_cap=soft_cap)

    # 1) bf16 weights, bias, auto vocab tile (single tile for this small vocab).
    out1 = jax.block_until_ready(
        proc(w_bf16, hidden_states, selected_token_indices, embedding_bias))
    ref1 = _reference(hidden_states, w_bf16.astype(jnp.float32), embedding_bias,
                      selected_token_indices, scale, soft_cap, org_vocab, jnp.bfloat16)
    assert out1.shape == (num_selected, org_vocab), out1.shape
    assert jnp.allclose(out1, ref1, atol=2e-3, rtol=2e-3), \
        float(jnp.max(jnp.abs(out1 - ref1)))

    # 2) bf16 weights, no bias (specialized kernel), tv=256 -> multi-step grid with
    #    a ragged last vocab tile (exercises partial-tile masking on inputs/outputs).
    out2 = jax.block_until_ready(
        proc(w_bf16, hidden_states, selected_token_indices, None, tv=256))
    ref2 = _reference(hidden_states, w_bf16.astype(jnp.float32), None,
                      selected_token_indices, scale, soft_cap, org_vocab, jnp.bfloat16)
    assert jnp.allclose(out2, ref2, atol=2e-3, rtol=2e-3), \
        float(jnp.max(jnp.abs(out2 - ref2)))

    # 3) int8 weights + per-row scales: halved HBM weight stream, dequant fused
    #    after the f32 MXU accumulate (v5e/v6e path).
    w_q, w_s = quantize_lm_head_int8(w_f32)
    out3 = jax.block_until_ready(
        proc(w_q, hidden_states, selected_token_indices, embedding_bias,
             weight_scales=w_s))
    w_deq = w_q.astype(jnp.float32) * w_s[:, None]
    ref3 = _reference(hidden_states, w_deq, embedding_bias,
                      selected_token_indices, scale, soft_cap, org_vocab, jnp.bfloat16)
    assert jnp.allclose(out3, ref3, atol=2e-3, rtol=2e-3), \
        float(jnp.max(jnp.abs(out3 - ref3)))

    print("KERNEL_OK")
</pallas_src>

<mosaic_0001>
module attributes {stable_mosaic.version = 11 : i64} {
  func.func @_logits_kernel(%arg0: i32, %arg1: memref<16x128xbf16, #tpu.memory_space<vmem>>, %arg2: memref<640x128xbf16, #tpu.memory_space<vmem>>, %arg3: memref<1x640xf32, #tpu.memory_space<vmem>>, %arg4: memref<16x640xf32, #tpu.memory_space<vmem>>) attributes {dimension_semantics = [#tpu.dimension_semantics<parallel>], iteration_bounds = array<i64: 1>, scalar_prefetch = 0 : i64, scratch_operands = 0 : i64, tpu.core_type = #tpu.core_type<tc>, window_params = [{pipeline_mode = #tpu.pipeline_mode<synchronous>, transform_indices = @transform_0, window_bounds = array<i64: 16, 128>}, {transform_indices = @transform_1, window_bounds = array<i64: 640, 128>}, {transform_indices = @transform_2, window_bounds = array<i64: 1, 640>}, {transform_indices = @transform_3, window_bounds = array<i64: 16, 640>}]} {
    %c0 = arith.constant 0 : index
    %c0_0 = arith.constant 0 : index
    %0 = vector.load %arg1[%c0, %c0_0] : memref<16x128xbf16, #tpu.memory_space<vmem>>, vector<16x128xbf16>
    %c0_1 = arith.constant 0 : index
    %c0_2 = arith.constant 0 : index
    %1 = vector.load %arg2[%c0_1, %c0_2] : memref<640x128xbf16, #tpu.memory_space<vmem>>, vector<640x128xbf16>
    %cst = arith.constant dense<0.000000e+00> : vector<16x640xf32>
    %2 = tpu.matmul %0, %1, %cst {dimension_numbers = #tpu.dot_dimension_numbers<[1], [1], [0], [0], [0, 0, 1, 0], [], []>} : vector<16x128xbf16>, vector<640x128xbf16>, vector<16x640xf32> -> vector<16x640xf32>
    %c0_3 = arith.constant 0 : index
    %c0_4 = arith.constant 0 : index
    %3 = vector.load %arg3[%c0_3, %c0_4] : memref<1x640xf32, #tpu.memory_space<vmem>>, vector<1x640xf32>
    %4 = vector.broadcast %3 : vector<1x640xf32> to vector<16x640xf32>
    %5 = arith.addf %2, %4 : vector<16x640xf32>
    %cst_5 = arith.constant 0.0333333351 : f32
    %6 = vector.broadcast %cst_5 : f32 to vector<16x640xf32>
    %7 = arith.mulf %5, %6 : vector<16x640xf32>
    %8 = math.tanh %7 : vector<16x640xf32>
    %cst_6 = arith.constant 1.500000e+01 : f32
    %9 = vector.broadcast %cst_6 : f32 to vector<16x640xf32>
    %10 = arith.mulf %8, %9 : vector<16x640xf32>
    %c0_7 = arith.constant 0 : index
    %c0_8 = arith.constant 0 : index
    %11 = vector.load %arg4[%c0_7, %c0_8] : memref<16x640xf32, #tpu.memory_space<vmem>>, vector<16x640xf32>
    tpu.vector_store %arg4[%c0_7, %c0_8], %10 {strides = array<i32>} : memref<16x640xf32, #tpu.memory_space<vmem>>, vector<16x640xf32>,
    return
  }
  func.func @transform_0(%arg0: i32) -> (i32, i32) {
    %c0_i32 = arith.constant 0 : i32
    %c0_i32_0 = arith.constant 0 : i32
    %c0_i32_1 = arith.constant 0 : i32
    return %c0_i32, %c0_i32_0 : i32, i32
  }
  func.func @transform_1(%arg0: i32) -> (i32, i32) {
    %c0_i32 = arith.constant 0 : i32
    %c0_i32_0 = arith.constant 0 : i32
    return %arg0, %c0_i32 : i32, i32
  }
  func.func @transform_2(%arg0: i32) -> (i32, i32) {
    %c0_i32 = arith.constant 0 : i32
    %c0_i32_0 = arith.constant 0 : i32
    return %c0_i32, %arg0 : i32, i32
  }
  func.func @transform_3(%arg0: i32) -> (i32, i32) {
    %c0_i32 = arith.constant 0 : i32
    %c0_i32_0 = arith.constant 0 : i32
    return %c0_i32, %arg0 : i32, i32
  }
}

</mosaic_0001>

<bundles_post_ra>
// kernel: tpu_custom_call.1
= control target key start
LH: loop header
LB: loop body
LE: loop exit
PB: predicated region body
PF: predicated region fallthrough
CT: control target
= control target key end

     0   :  { %8 = vsyncpa [#allocation3], 0  ;;  %s911_s0 = inlined_call_operand.hbm [shape: bf16[16,128], index: 0, kind: input, shape index: {}]   ;;  %s912_s1 = inlined_call_operand.hbm [shape: bf16[640,128], index: 1, kind: input, shape index: {}]   ;;  %s913_s2 = inlined_call_operand.vmem [shape: f32[1,640], index: 2, kind: input, shape index: {}]   ;;  %s914_s3 = inlined_call_operand.hbm [shape: f32[16,640], index: 3, kind: output, shape index: {}]  }
   0x1   :  { %9 = vsyncpa [#allocation6], 0 }
   0x2   :  { %10 = vsyncpa [#allocation4], 0  ;;  %s832_s12 = smov [#allocation2]   ;;  %s760_s16 = scalar_lea.hbm %s911_s0, 128 }
   0x3   :  { %s16_s13 = sshll.u32 %s832_s12, 4  ;;  %p761_p0 = scmp.ne.s32.totalorder %s911_s0, %s760_s16  ;;  %s17_s13 = int_to_ptr.vmem [resolvable:$true] %s16_s13 }
   0x4   :  { %p764_p1 = scmp.lt.u32.totalorder %s760_s16, %s911_s0 }
   0x6   :  { %p766_p2 = pnand %p764_p1, %p761_p0 }
   0x8   :  { %769 = shalt.err (!%p766_p2)
}
   0x9   :  { %s770_s21 = scalar_lea.vmem %s17_s13, 128  ;;  %p775_p4 = scmp.lt.s32.totalorder %s17_s13, %s17_s13 }
   0xa   :  { %p771_p3 = scmp.ne.s32.totalorder %s17_s13, %s770_s21  ;;  %p776_p5 = scmp.lt.s32.totalorder %s770_s21, %s770_s21 }
   0xc   :  { %p777_p6 = por %p776_p5, %p775_p4 }
   0xe   :  { %p778_p7 = pnand %p777_p6, %p771_p3 }
  0x10   :  { %781 = shalt.err (!%p778_p7)
}
  0x11   :  { %s833_s22 = smov 64   ;;  %s834_s23 = smov 4  }
  0x12   :  { %22 = dma.hbm_to_vmem [thread:$0]  %s911_s0, 128, %s17_s13, [#allocation3], %s833_s22, %s833_s22, %s834_s23  }
  0x13   :  { %s835_s26 = smov [#allocation5]   ;;  %s782_s30 = scalar_lea.hbm %s912_s1, 5120 }
  0x14   :  { %s28_s27 = sshll.u32 %s835_s26, 4  ;;  %p783_p8 = scmp.ne.s32.totalorder %s912_s1, %s782_s30  ;;  %s29_s27 = int_to_ptr.vmem [resolvable:$true] %s28_s27 }
  0x15   :  { %p786_p9 = scmp.lt.u32.totalorder %s782_s30, %s912_s1 }
  0x17   :  { %p788_p10 = pnand %p786_p9, %p783_p8 }
  0x19   :  { %791 = shalt.err (!%p788_p10)
}
  0x1a   :  { %s792_s8 = scalar_lea.vmem %s29_s27, 5120  ;;  %p797_p12 = scmp.lt.s32.totalorder %s29_s27, %s29_s27 }
  0x1b   :  { %p793_p11 = scmp.ne.s32.totalorder %s29_s27, %s792_s8  ;;  %p798_p13 = scmp.lt.s32.totalorder %s792_s8, %s792_s8 }
  0x1d   :  { %p799_p0 = por %p798_p13, %p797_p12 }
  0x1f   :  { %p800_p1 = pnand %p799_p0, %p793_p11 }
  0x21   :  { %803 = shalt.err (!%p800_p1)
}
  0x22   :  { %34 = dma.hbm_to_vmem [thread:$0]  %s912_s1, 5120, %s29_s27, [#allocation6], %s833_s22, %s833_s22, %s834_s23  }
  0x23   :  { %826 = dma.done.wait [#allocation3], 128  }
  0x24   :  { %827 = vsyncadd [#allocation3], 4294967168 }
  0x25   :  { %828 = dma.done.wait [#allocation6], 5120  }
  0x26   :  { %829 = vsyncadd [#allocation6], 4294962176  ;;  %v699_v0 = vld [vmem:[#allocation5 + $0x40] sm:$0xff]   ;;  %v701_v2 = vld [vmem:[#allocation5 + $0x48] sm:$0xff]   ;;  %v836_v30 = vmov 0.0   ;;  %vm837_vm0 = vmmov 0   ;;  %v128_v42 = vlaneseq }
  0x27   :  { %v700_v1 = vld [vmem:[#allocation5] sm:$0xff]   ;;  %625 = vmatprep.subr.bf16.mxu0 %v699_v0  ;;  %v702_v3 = vld [vmem:[#allocation5 + $0x8] sm:$0xff]   ;;  %v703_v4 = vld [vmem:[#allocation5 + $0x50] sm:$0xff]  }
  0x28   :  { %626 = vmatpush3.bf16.xpose.msra.mxu0 %v700_v1  ;;  %v704_v5 = vld [vmem:[#allocation5 + $0x10] sm:$0xff]   ;;  %v705_v6 = vld [vmem:[#allocation5 + $0x58] sm:$0xff]   ;;  %v715_v7 = vld [vmem:[#allocation5 + $0xc0] sm:$0xff]   ;;  %v129_v43 = vshrl.u32 %v128_v42, 7 }
  0x29   :  { %627 = vmatprep.subr.bf16.mxu0 %v701_v2  ;;  %v716_v8 = vld [vmem:[#allocation5 + $0x80] sm:$0xff]   ;;  %643 = vmatprep.subr.bf16.mxu1 %v715_v7  ;;  %v885_v9 = vld [vmem:[#allocation2] sm:$0xff]   ;;  %v719_v10 = vld [vmem:[#allocation5 + $0xc8] sm:$0xff]  }
  0x2a   :  { %644 = vmatpush3.bf16.xpose.msra.mxu1 %v716_v8  ;;  %641 = vmatprep.mubr.bf16.mxu0 %v885_v9  ;;  %v706_v11 = vld [vmem:[#allocation5 + $0x18] sm:$0xff]   ;;  %v707_v12 = vld [vmem:[#allocation5 + $0x60] sm:$0xff]   ;;  %v720_v13 = vld [vmem:[#allocation5 + $0x88] sm:$0xff]   ;;  %v146_v44 = vsub.s32 4, %v129_v43  ;;  %v130_v47 = vsub.s32 0, %v129_v43  ;;  %v134_v48 = vsub.s32 1, %v129_v43 }
  0x2b   :  { %659 = vmatprep.mubr.bf16.mxu1 %v885_v9  ;;  %645 = vmatprep.subr.bf16.mxu1 %v719_v10  ;;  %v722_v14 = vld [vmem:[#allocation5 + $0xd0] sm:$0xff]   ;;  %v708_v15 = vld [vmem:[#allocation5 + $0x20] sm:$0xff]   ;;  %v709_v16 = vld [vmem:[#allocation5 + $0x68] sm:$0xff]   ;;  %v138_v63 = vsub.s32 2, %v129_v43  ;;  %v142_v0 = vsub.s32 3, %v129_v43 }
  0x2c   :  { %v723_v17 = vld [vmem:[#allocation5 + $0x90] sm:$0xff]   ;;  %v725_v18 = vld [vmem:[#allocation5 + $0xd8] sm:$0xff]   ;;  %v710_v19 = vld [vmem:[#allocation5 + $0x28] sm:$0xff]  }
  0x2d   :  { %v711_v20 = vld [vmem:[#allocation5 + $0x70] sm:$0xff]   ;;  %v726_v21 = vld [vmem:[#allocation5 + $0x98] sm:$0xff]   ;;  %v728_v22 = vld [vmem:[#allocation5 + $0xe0] sm:$0xff]  }
  0x2e   :  { %v712_v23 = vld [vmem:[#allocation5 + $0x30] sm:$0xff]   ;;  %v729_v24 = vld [vmem:[#allocation5 + $0xa0] sm:$0xff]   ;;  %v713_v25 = vld [vmem:[#allocation5 + $0x78] sm:$0xff]  }
  0x2f   :  { %v731_v26 = vld [vmem:[#allocation5 + $0xe8] sm:$0xff]   ;;  %v714_v27 = vld [vmem:[#allocation5 + $0x38] sm:$0xff]   ;;  %v734_v29 = vld [vmem:[#allocation5 + $0xf0] sm:$0xff]  }
  0x30   :  { %628 = vmatpush3.bf16.xpose.msra.mxu0 %v702_v3  ;;  %v732_v28 = vld [vmem:[#allocation5 + $0xa8] sm:$0xff]   ;;  %v718_v31 = vld [vmem:[#allocation5 + $0x100] sm:$0xff]   ;;  %v735_v32 = vld [vmem:[#allocation5 + $0xb0] sm:$0xff]  }
  0x31   :  { %629 = vmatprep.subr.bf16.mxu0 %v703_v4  ;;  %v737_v33 = vld [vmem:[#allocation5 + $0xf8] sm:$0xff]   ;;  %v721_v34 = vld [vmem:[#allocation5 + $0x108] sm:$0xff]   ;;  %v724_v36 = vld [vmem:[#allocation5 + $0x110] sm:$0xff]  }
  0x32   :  { %646 = vmatpush3.bf16.xpose.msra.mxu1 %v720_v13  ;;  %v738_v35 = vld [vmem:[#allocation5 + $0xb8] sm:$0xff]   ;;  %v730_v38 = vld [vmem:[#allocation5 + $0x120] sm:$0xff]   ;;  %v733_v39 = vld [vmem:[#allocation5 + $0x128] sm:$0xff]  }
  0x33   :  { %647 = vmatprep.subr.bf16.mxu1 %v722_v14  ;;  %v727_v37 = vld [vmem:[#allocation5 + $0x118] sm:$0xff]   ;;  %v736_v40 = vld [vmem:[#allocation5 + $0x130] sm:$0xff]  }
  0x34   :  { %v739_v41 = vld [vmem:[#allocation5 + $0x138] sm:$0xff]  }
  0x35   :  { %v126_v45 = vld [vmem:[%s913_s2] sm:$0x1f]  ;;  %s838_s2 = smov [#allocation7]  }
  0x36   :  { %v895_v46 = vrot.slane %v126_v45, %v146_v44  ;;  %v131_v49 = vrot.slane %v126_v45, %v130_v47  ;;  %v135_v50 = vrot.slane %v126_v45, %v134_v48  ;;  %v139_v1 = vrot.slane %v126_v45, %v138_v63  ;;  %s571_s11 = sshll.u32 %s838_s2, 4  ;;  %s572_s11 = int_to_ptr.vmem [resolvable:$true] %s571_s11 }
  0x37   :  { %v143_v2 = vrot.slane %v126_v45, %v142_v0  ;;  %s804_s12 = scalar_lea.vmem %s572_s11, 1280  ;;  %p809_p3 = scmp.lt.s32.totalorder %s572_s11, %s572_s11 }
  0x38   :  { %630 = vmatpush3.bf16.xpose.msra.mxu0 %v704_v5  ;;  %p805_p2 = scmp.ne.s32.totalorder %s572_s11, %s804_s12  ;;  %p810_p4 = scmp.lt.s32.totalorder %s804_s12, %s804_s12 }
  0x39   :  { %631 = vmatprep.subr.bf16.mxu0 %v705_v6 }
  0x3a   :  { %648 = vmatpush3.bf16.xpose.msra.mxu1 %v723_v17  ;;  %p811_p5 = por %p810_p4, %p809_p3 }
  0x3b   :  { %649 = vmatprep.subr.bf16.mxu1 %v725_v18 }
  0x3c   :  { %p812_p6 = pnand %p811_p5, %p805_p2 }
  0x40   :  { %632 = vmatpush3.bf16.xpose.msra.mxu0 %v706_v11 }
  0x41   :  { %633 = vmatprep.subr.bf16.mxu0 %v707_v12 }
  0x42   :  { %650 = vmatpush3.bf16.xpose.msra.mxu1 %v726_v21 }
  0x43   :  { %651 = vmatprep.subr.bf16.mxu1 %v728_v22 }
  0x48   :  { %634 = vmatpush3.bf16.xpose.msra.mxu0 %v708_v15 }
  0x49   :  { %635 = vmatprep.subr.bf16.mxu0 %v709_v16 }
  0x4a   :  { %652 = vmatpush3.bf16.xpose.msra.mxu1 %v729_v24 }
  0x4b   :  { %653 = vmatprep.subr.bf16.mxu1 %v731_v26 }
  0x50   :  { %636 = vmatpush3.bf16.xpose.msra.mxu0 %v710_v19 }
  0x51   :  { %637 = vmatprep.subr.bf16.mxu0 %v711_v20 }
  0x52   :  { %654 = vmatpush3.bf16.xpose.msra.mxu1 %v732_v28 }
  0x53   :  { %655 = vmatprep.subr.bf16.mxu1 %v734_v29 }
  0x58   :  { %638 = vmatpush3.bf16.xpose.msra.mxu0 %v712_v23 }
  0x59   :  { %639 = vmatprep.subr.bf16.mxu0 %v713_v25 }
  0x5a   :  { %656 = vmatpush3.bf16.xpose.msra.mxu1 %v735_v32 }
  0x5b   :  { %657 = vmatprep.subr.bf16.mxu1 %v737_v33 }
  0x60   :  { %640 = vmatpush3.bf16.xpose.msra.mxu0 %v714_v27 }
  0x61   :  { %670 = vmatprep.subr.bf16.mxu0 %v836_v30 }
  0x62   :  { %658 = vmatpush3.bf16.xpose.msra.mxu1 %v738_v35 }
  0x67   :  { %642 = vmatmul.mubr.bf16.vlgmr.msra.gmra.mrb[0].mxu0 %v885_v9 }
  0x68   :  { %671 = vmatpush3.bf16.xpose.msra.mxu0 %v718_v31  ;;  %686 = vmatprep.mubr.msk.bf16.mxu0 %vm837_vm0, %v836_v30 }
  0x69   :  { %672 = vmatprep.subr.bf16.mxu0 %v836_v30  ;;  %660 = vmatmul.mubr.bf16.vlgmr.msra.gmra.mrb[0].mxu1 %v885_v9 }
  0x70   :  { %673 = vmatpush3.bf16.xpose.msra.mxu0 %v721_v34 }
  0x71   :  { %674 = vmatprep.subr.bf16.mxu0 %v836_v30 }
  0x78   :  { %675 = vmatpush3.bf16.xpose.msra.mxu0 %v724_v36 }
  0x79   :  { %676 = vmatprep.subr.bf16.mxu0 %v836_v30 }
  0x80   :  { %677 = vmatpush3.bf16.xpose.msra.mxu0 %v727_v37 }
  0x81   :  { %678 = vmatprep.subr.bf16.mxu0 %v836_v30 }
  0x88   :  { %679 = vmatpush3.bf16.xpose.msra.mxu0 %v730_v38 }
  0x89   :  { %680 = vmatprep.subr.bf16.mxu0 %v836_v30 }
  0x90   :  { %681 = vmatpush3.bf16.xpose.msra.mxu0 %v733_v39 }
  0x91   :  { %682 = vmatprep.subr.bf16.mxu0 %v836_v30 }
  0x98   :  { %683 = vmatpush3.bf16.xpose.msra.mxu0 %v736_v40 }
  0x99   :  { %684 = vmatprep.subr.bf16.mxu0 %v836_v30 }
  0xa0   :  { %685 = vmatpush3.bf16.xpose.msra.mxu0 %v739_v41 }
  0xa7   :  { %687 = vmatmul.mubr.bf16.vlgmr.msra.gmra.mrb[4].mxu0 %v885_v9 }
 0x13a   :  { %v433_v51 = vpop.f32.mrb[0].mxu0 }
 0x13b   :  { %v434_v52 = vadd.f32 %v433_v51, %v131_v49  ;;  %v435_v53 = vpop.f32.mrb[1].mxu0 }
 0x13c   :  { %v436_v54 = vadd.f32 %v435_v53, %v135_v50  ;;  %v437_v55 = vpop.f32.mrb[2].mxu0  ;;  %v476_v6 = vpop.f32.mrb[0].mxu1 }
 0x13d   :  { %v526_v56 = vmul.f32 0.033333335, %v434_v52  ;;  %v438_v57 = vadd.f32 %v437_v55, %v131_v49  ;;  %v439_v58 = vpop.f32.mrb[3].mxu0  ;;  %v477_v9 = vadd.f32 %v476_v6, %v139_v1  ;;  %v478_v10 = vpop.f32.mrb[1].mxu1 }
 0x13e   :  { %v527_v59 = vmul.f32 0.033333335, %v436_v54  ;;  %v440_v60 = vadd.f32 %v439_v58, %v135_v50  ;;  %v479_v13 = vadd.f32 %v478_v10, %v143_v2  ;;  %v480_v14 = vpop.f32.mrb[2].mxu1 }
 0x13f   :  { %740 = vtanh.f32 %v526_v56  ;;  %v531_v61 = vmul.f32 0.033333335, %v438_v57  ;;  %v528_v16 = vmul.f32 0.033333335, %v477_v9  ;;  %v481_v17 = vadd.f32 %v480_v14, %v139_v1  ;;  %v482_v18 = vpop.f32.mrb[3].mxu1 }
 0x140   :  { %742 = vtanh.f32 %v527_v59  ;;  %v532_v62 = vmul.f32 0.033333335, %v440_v60  ;;  %v529_v19 = vmul.f32 0.033333335, %v479_v13  ;;  %v483_v20 = vadd.f32 %v482_v18, %v143_v2 }
 0x141   :  { %744 = vtanh.f32 %v531_v61  ;;  %v533_v21 = vmul.f32 0.033333335, %v481_v17 }
 0x142   :  { %746 = vtanh.f32 %v532_v62  ;;  %v534_v22 = vmul.f32 0.033333335, %v483_v20 }
 0x143   :  { %748 = vtanh.f32 %v528_v16 }
 0x144   :  { %750 = vtanh.f32 %v529_v19 }
 0x145   :  { %752 = vtanh.f32 %v533_v21 }
 0x146   :  { %754 = vtanh.f32 %v534_v22 }
 0x149   :  { %v741_v3 = vpop.eup %740 }
 0x14a   :  { %v743_v4 = vpop.eup %742  ;;  %v546_v5 = vmul.f32 15.0, %v741_v3 }
 0x14b   :  { %v745_v7 = vpop.eup %744  ;;  %v547_v8 = vmul.f32 15.0, %v743_v4 }
 0x14c   :  { %v747_v11 = vpop.eup %746  ;;  %556 = vst [vmem:[#allocation7] sm:$0xff] %v546_v5  ;;  %v551_v12 = vmul.f32 15.0, %v745_v7 }
 0x14d   :  { %557 = vst [vmem:[#allocation7 + $0x8] sm:$0xff] %v547_v8  ;;  %v552_v15 = vmul.f32 15.0, %v747_v11  ;;  %v749_v23 = vpop.eup %748 }
 0x14e   :  { %561 = vst [vmem:[#allocation7 + $0x28] sm:$0xff] %v551_v12  ;;  %v751_v24 = vpop.eup %750  ;;  %v548_v25 = vmul.f32 15.0, %v749_v23 }
 0x14f   :  { %562 = vst [vmem:[#allocation7 + $0x30] sm:$0xff] %v552_v15  ;;  %v753_v26 = vpop.eup %752  ;;  %v549_v27 = vmul.f32 15.0, %v751_v24 }
 0x150   :  { %v755_v28 = vpop.eup %754  ;;  %558 = vst [vmem:[#allocation7 + $0x10] sm:$0xff] %v548_v25  ;;  %v553_v29 = vmul.f32 15.0, %v753_v26 }
 0x151   :  { %559 = vst [vmem:[#allocation7 + $0x18] sm:$0xff] %v549_v27  ;;  %v554_v30 = vmul.f32 15.0, %v755_v28 }
 0x152   :  { %563 = vst [vmem:[#allocation7 + $0x38] sm:$0xff] %v553_v29 }
 0x153   :  { %564 = vst [vmem:[#allocation7 + $0x40] sm:$0xff] %v554_v30 }
 0x17a   :  { %v519_v31 = vpop.f32.mrb[4].mxu0 }
 0x17b   :  { %v520_v32 = vadd.f32 %v519_v31, %v895_v46  ;;  %v688_v33 = vpop.f32.mrb[5].mxu0 }
 0x17c   :  { %v522_v34 = vpop.f32.mrb[6].mxu0 }
 0x17d   :  { %v530_v35 = vmul.f32 0.033333335, %v520_v32  ;;  %v523_v36 = vadd.f32 %v522_v34, %v895_v46  ;;  %v689_v37 = vpop.f32.mrb[7].mxu0 }
 0x17f   :  { %756 = vtanh.f32 %v530_v35  ;;  %v535_v38 = vmul.f32 0.033333335, %v523_v36 }
 0x181   :  { %758 = vtanh.f32 %v535_v38 }
 0x189   :  { %v757_v39 = vpop.eup %756 }
 0x18a   :  { %v550_v40 = vmul.f32 15.0, %v757_v39 }
 0x18b   :  { %v759_v41 = vpop.eup %758 }
 0x18c   :  { %560 = vst [vmem:[#allocation7 + $0x20] sm:$0xff] %v550_v40  ;;  %v555_v42 = vmul.f32 15.0, %v759_v41 }
 0x18e   :  { %565 = vst [vmem:[#allocation7 + $0x48] sm:$0xff] %v555_v42 }
 0x18f   :  { %815 = shalt.err (!%p812_p6)
}
 0x190   :  { %s816_s15 = scalar_lea.hbm %s914_s3, 1280 }
 0x191   :  { %p817_p7 = scmp.ne.s32.totalorder %s914_s3, %s816_s15  ;;  %p820_p8 = scmp.lt.u32.totalorder %s816_s15, %s914_s3 }
 0x193   :  { %p822_p9 = pnand %p820_p8, %p817_p7 }
 0x195   :  { %825 = shalt.err (!%p822_p9)
}
 0x196   :  { %s839_s20 = smov 640   ;;  %s840_s21 = smov 40  }
 0x197   :  { %577 = dma.vmem_to_hbm [thread:$0]  %s572_s11, 1280, %s914_s3, [#allocation4], %s839_s20, %s839_s20, %s840_s21  }
 0x198   :  { %830 = dma.done.wait [#allocation4], 1280  }
 0x199   :  { %831 = vsyncadd [#allocation4], 4294966016 }
 0x19a   :  { %581 = vsyncpa [#allocation3], 1 }
 0x19b   :  { %582 = vsyncpa [#allocation6], 1 }
 0x19c   :  { %583 = vsyncpa [#allocation4], 1 }

</bundles_post_ra>
